<compile_context>
chip_gen: v6e
topology: v6e:2x2x1
jax: 0.10.0
libtpu: 0.0.40
codegen_flags: <defaults>
</compile_context>

<pallas_src>
import math
import functools

import jax
import jax.numpy as jnp
from jax.experimental import pallas as pl
from jax.experimental.pallas import tpu as pltpu


def _vq_kernel(x_ref, e2x_ref, et_ref, e2_ref, q_ref, kl_ref, cnt_ref,
               *, M, log_M, exp_dtype):
    """One grid step: latent group n, batch element b, one tile of HW columns.

    x_ref  : (1, 1, D, T)  input columns (D on sublanes, HW tile on lanes)
    e2x_ref: (1, M, D)     codebook pre-scaled by 2 (logits matmul operand)
    et_ref : (1, D, M)     unscaled transposed codebook (quantization matmul)
    e2_ref : (1, M, 1)     precomputed ||e||^2
    q_ref  : (1, 1, D, T)  quantized output (same layout/dtype family as x)
    kl_ref : (1, 1, 1, 1)  running KL sum for (n, b)   (revisited across t)
    cnt_ref: (1, 1, M, 1)  running one-hot counts for (n, b)
    """
    t = pl.program_id(2)

    x = x_ref[0, 0].astype(jnp.float32)                                # (D, T)

    # logits^T = 2*E@x - ||E||^2.  The per-column ||x||^2 constant is dropped
    # (softmax / argmax over M are invariant to it); the *2 is folded into the
    # pre-scaled codebook in the wrapper.
    logits = jnp.dot(e2x_ref[0], x,
                     preferred_element_type=jnp.float32) - e2_ref[0]   # (M, T)
    lmax = jnp.max(logits, axis=0, keepdims=True)                      # (1, T)
    z = logits - lmax                                                  # (M, T); logits dead

    # eval-mode "sample": one-hot of the FIRST maximal codeword per column
    # (exact torch argmax tie-break).  z == 0 exactly iff logits == lmax.
    row = jax.lax.broadcasted_iota(jnp.int32, (M, 1), 0)               # (M, 1)
    first_idx = jnp.min(jnp.where(z == 0.0, row, M), axis=0, keepdims=True)  # (1, T)
    onehot = (row == first_idx).astype(jnp.float32)                    # (M, T)

    # quantized^T = E^T @ onehot   (== bmm(samples, embedding), transposed)
    q_ref[0, 0] = jnp.dot(et_ref[0], onehot,
                          preferred_element_type=jnp.float32).astype(q_ref.dtype)

    # KL per column: sum_m p*(logp + logM) = (sum_m ez*z)/s - log(s) + logM.
    # The torch probs==0 guard is redundant: ez==0 terms contribute exactly 0.
    if jnp.dtype(exp_dtype) == jnp.float32:
        ez = jnp.exp(z)
    else:  # opt-in bf16 EUP path (v6e/v7x); accumulate s and ez*z in f32.
        ez = jnp.exp(z.astype(exp_dtype)).astype(jnp.float32)
    s = jnp.sum(ez, axis=0, keepdims=True)                             # (1, T)
    ezz = jnp.sum(ez * z, axis=0, keepdims=True)                       # (1, T)
    kl_cols = ezz / s - jnp.log(s) + log_M                             # (1, T)

    @pl.when(t == 0)
    def _():
        kl_ref[...] = jnp.zeros_like(kl_ref)
        cnt_ref[...] = jnp.zeros_like(cnt_ref)

    kl_ref[0, 0] += jnp.sum(kl_cols, axis=1, keepdims=True)            # (1, 1)
    cnt_ref[0, 0] += jnp.sum(onehot, axis=1, keepdims=True)            # (M, 1)


def _tpu_kind():
    try:
        return jax.devices()[0].device_kind.lower()
    except Exception:
        return ""


def _pick_tile_hw(hw, d, m, itemsize, *, target_x_bytes, max_mt_elems=256 * 1024):
    """Largest HW tile dividing hw s.t. the x block is ~target_x_bytes per buffer
    and the (M, T) elementwise intermediates stay bounded (tile scales with D, M)."""
    cap = min(hw,
              max(128, int(target_x_bytes) // max(1, d * itemsize)),
              max(128, max_mt_elems // max(1, m)))
    if hw <= cap:
        return hw
    t = (cap // 128) * 128
    while t >= 128:                  # prefer lane-aligned tiles that divide hw
        if hw % t == 0:
            return t
        t -= 128
    return hw                        # full spatial extent is always a legal block


def vq_embedding_gs_soft(x, embedding, *, tile_hw=None, exp_dtype=None):
    """Eval-mode forward of VQEmbeddingGSSoft.

    x:         (B, C, H, W) float, C == N * D
    embedding: (N, M, D)    float
    returns (quantized (B, C, H, W) in x.dtype, KL scalar, perplexity_sum scalar)
    """
    B, C, H, W = x.shape
    N, M, D = embedding.shape
    assert C == N * D
    HW = H * W

    kind = _tpu_kind()
    is_v7 = ("v7" in kind) or ("tpu7" in kind)
    # v7x: 64 MiB physical VMEM -> keep the whole pipeline under ~48 MiB.
    vmem_limit = (48 << 20) if is_v7 else (64 << 20)

    x_itemsize = jnp.dtype(x.dtype).itemsize
    q_dtype = x.dtype
    q_itemsize = jnp.dtype(q_dtype).itemsize

    if tile_hw is None:
        tile_hw = _pick_tile_hw(HW, D, M, x_itemsize,
                                target_x_bytes=(2 << 20) if is_v7 else (4 << 20))
    assert HW % tile_hw == 0

    if exp_dtype is None:
        exp_dtype = jnp.float32     # safe default; bf16 is opt-in (see TODO above)

    # Free reshape only — no HBM relayout of x (NCHW -> (B, N, D, HW)), native dtype.
    x_t = x.reshape(B, N, D, HW)
    emb = embedding.astype(jnp.float32)                 # (N, M, D)
    e2x = 2.0 * emb                                     # pre-scaled matmul operand
    emb_t = jnp.swapaxes(emb, 1, 2)                     # (N, D, M)  tiny
    e2 = jnp.sum(emb * emb, axis=2, keepdims=True)      # (N, M, 1)  tiny, once

    grid = (N, B, HW // tile_hw)
    kernel = functools.partial(_vq_kernel, M=M, log_M=float(math.log(M)),
                               exp_dtype=exp_dtype)

    cost = pl.CostEstimate(
        flops=4 * B * N * HW * M * D,                    # two MXU matmuls per column
        transcendentals=B * N * HW * M,                  # exp for the KL path
        bytes_accessed=B * N * D * HW * (x_itemsize + q_itemsize)
                       + 4 * N * M * (2 * D + 2),        # x read + q write + codebooks
    )

    q_t, kl_acc, counts = pl.pallas_call(
        kernel,
        out_shape=(
            jax.ShapeDtypeStruct((B, N, D, HW), q_dtype),    # quantized^T
            jax.ShapeDtypeStruct((N, B, 1, 1), jnp.float32), # KL sum per (n, b)
            jax.ShapeDtypeStruct((N, B, M, 1), jnp.float32), # one-hot counts per (n, b)
        ),
        grid_spec=pltpu.PrefetchScalarGridSpec(
            num_scalar_prefetch=0,
            grid=grid,
            in_specs=[
                pl.BlockSpec((1, 1, D, tile_hw), lambda n, b, t: (b, n, 0, t)),
                pl.BlockSpec((1, M, D), lambda n, b, t: (n, 0, 0)),
                pl.BlockSpec((1, D, M), lambda n, b, t: (n, 0, 0)),
                pl.BlockSpec((1, M, 1), lambda n, b, t: (n, 0, 0)),
            ],
            out_specs=[
                pl.BlockSpec((1, 1, D, tile_hw), lambda n, b, t: (b, n, 0, t)),
                pl.BlockSpec((1, 1, 1, 1), lambda n, b, t: (n, b, 0, 0)),
                pl.BlockSpec((1, 1, M, 1), lambda n, b, t: (n, b, 0, 0)),
            ],
        ),
        compiler_params=pltpu.CompilerParams(
            # KL/count accumulators are per (n, b), so both N and B can be
            # megacore-parallel; only the HW-tile axis (revisited output) is
            # "arbitrary".  Keeps both v7x TensorCores busy when N == 1.
            dimension_semantics=("parallel", "parallel", "arbitrary"),
            vmem_limit_bytes=vmem_limit,
        ),
        cost_estimate=cost,
    )(x_t, e2x, emb_t, e2)

    # Free reshape back to NCHW channel order (c = n * D + d) — no relayout.
    quantized = q_t.reshape(B, C, H, W)

    # KL: sum over (N, H, W, M), mean over B  ==  total sum / B.
    kl = jnp.sum(kl_acc) / B

    # perplexity per latent group from average one-hot usage, then summed.
    avg_probs = jnp.sum(counts[..., 0], axis=1) / float(B * HW)        # (N, M)
    perplexity = jnp.exp(-jnp.sum(avg_probs * jnp.log(avg_probs + 1e-10), axis=-1))
    return quantized, kl, jnp.sum(perplexity)


def _reference(x, embedding):
    """Pure-JAX reference (eval-mode), mirroring the PyTorch math."""
    B, C, H, W = x.shape
    N, M, D = embedding.shape
    xf = x.reshape(B, N, D, H, W).transpose(1, 0, 3, 4, 2).reshape(N, -1, D)
    e2 = jnp.sum(embedding**2, axis=2)[:, None, :]                  # (N, 1, M)
    x2 = jnp.sum(xf**2, axis=2, keepdims=True)                      # (N, L, 1)
    xe = jnp.einsum("nld,nmd->nlm", xf, embedding)                  # (N, L, M)
    dist = e2 + x2 - 2.0 * xe
    logits = -dist
    logp = jax.nn.log_softmax(logits, axis=-1)
    probs = jax.nn.softmax(logits, axis=-1)
    kl_t = jnp.where(probs == 0.0, 0.0, probs * (logp + math.log(M)))
    kl = jnp.sum(kl_t) / B
    # argmax(probs) == argmin(dist) == argmax(2*x.e - e2) exactly; use the
    # well-conditioned form so rounding of the per-row ||x||^2 constant cannot
    # flip float-equal ties.
    idx = jnp.argmax(2.0 * xe - e2, axis=-1)
    onehot = jax.nn.one_hot(idx, M, dtype=jnp.float32)
    q = jnp.einsum("nlm,nmd->nld", onehot, embedding)
    q = q.reshape(N, B, H, W, D).transpose(1, 0, 4, 2, 3).reshape(B, C, H, W)
    avg = jnp.mean(onehot, axis=1)
    perp = jnp.exp(-jnp.sum(avg * jnp.log(avg + 1e-10), axis=-1)).sum()
    return q, kl, perp


if __name__ == "__main__":
    # latent_dim N=2, num_embeddings M=16, embedding_dim D=8 -> C = N*D = 16;
    # B=2, H=W=16 -> 256 spatial positions per (b, n): one lane-dense tile each.
    B, N, M, D, H, W = 2, 2, 16, 8, 16, 16
    C = N * D

    key = jax.random.PRNGKey(0)
    kx, ke = jax.random.split(key)
    x = jax.random.normal(kx, (B, C, H, W), dtype=jnp.float32)
    # nn.init.uniform_(embedding, -1/M, 1/M), deterministic
    embedding = jax.random.uniform(
        ke, (N, M, D), minval=-1.0 / M, maxval=1.0 / M, dtype=jnp.float32
    )

    quantized, kl, perp = jax.block_until_ready(
        jax.jit(vq_embedding_gs_soft)(x, embedding)
    )

    q_ref, kl_ref, perp_ref = _reference(x, embedding)
    assert quantized.shape == (B, C, H, W)
    assert quantized.dtype == x.dtype
    assert jnp.allclose(quantized, q_ref, atol=1e-4, rtol=1e-4)
    assert jnp.allclose(kl, kl_ref, atol=1e-2, rtol=2e-3)
    assert jnp.allclose(perp, perp_ref, atol=1e-3, rtol=1e-4)

    print("KERNEL_OK")
</pallas_src>

<mosaic_0001>
module attributes {stable_mosaic.version = 11 : i64} {
  func.func @_vq_kernel(%arg0: i32, %arg1: i32, %arg2: i32, %arg3: memref<1x1x8x256xf32, #tpu.memory_space<vmem>>, %arg4: memref<1x16x8xf32, #tpu.memory_space<vmem>>, %arg5: memref<1x8x16xf32, #tpu.memory_space<vmem>>, %arg6: memref<1x16x1xf32, #tpu.memory_space<vmem>>, %arg7: memref<1x1x8x256xf32, #tpu.memory_space<vmem>>, %arg8: memref<1x1x1x1xf32, #tpu.memory_space<vmem>>, %arg9: memref<1x1x16x1xf32, #tpu.memory_space<vmem>>) attributes {dimension_semantics = [#tpu.dimension_semantics<parallel>, #tpu.dimension_semantics<parallel>, #tpu.dimension_semantics<arbitrary>], iteration_bounds = array<i64: 2, 2, 1>, scalar_prefetch = 0 : i64, scratch_operands = 0 : i64, tpu.core_type = #tpu.core_type<tc>, window_params = [{transform_indices = @transform_0, window_bounds = array<i64: 1, 1, 8, 256>}, {transform_indices = @transform_1, window_bounds = array<i64: 1, 16, 8>}, {transform_indices = @transform_2, window_bounds = array<i64: 1, 8, 16>}, {transform_indices = @transform_3, window_bounds = array<i64: 1, 16, 1>}, {transform_indices = @transform_4, window_bounds = array<i64: 1, 1, 8, 256>}, {transform_indices = @transform_5, window_bounds = array<i64: 1, 1, 1, 1>}, {transform_indices = @transform_6, window_bounds = array<i64: 1, 1, 16, 1>}]} {
    %c0 = arith.constant 0 : index
    %c0_0 = arith.constant 0 : index
    %c0_1 = arith.constant 0 : index
    %c0_2 = arith.constant 0 : index
    %0 = vector.load %arg3[%c0, %c0_0, %c0_1, %c0_2] : memref<1x1x8x256xf32, #tpu.memory_space<vmem>>, vector<1x1x8x256xf32>
    %1 = vector.shape_cast %0 : vector<1x1x8x256xf32> to vector<8x256xf32>
    %c0_3 = arith.constant 0 : index
    %c0_4 = arith.constant 0 : index
    %c0_5 = arith.constant 0 : index
    %2 = vector.load %arg4[%c0_3, %c0_4, %c0_5] : memref<1x16x8xf32, #tpu.memory_space<vmem>>, vector<1x16x8xf32>
    %3 = vector.shape_cast %2 : vector<1x16x8xf32> to vector<16x8xf32>
    %cst = arith.constant dense<0.000000e+00> : vector<16x256xf32>
    %4 = tpu.matmul %3, %1, %cst {dimension_numbers = #tpu.dot_dimension_numbers<[1], [0], [0], [1], [0, 0, 1, 1], [], []>} : vector<16x8xf32>, vector<8x256xf32>, vector<16x256xf32> -> vector<16x256xf32>
    %c0_6 = arith.constant 0 : index
    %c0_7 = arith.constant 0 : index
    %c0_8 = arith.constant 0 : index
    %5 = vector.load %arg6[%c0_6, %c0_7, %c0_8] : memref<1x16x1xf32, #tpu.memory_space<vmem>>, vector<1x16x1xf32>
    %6 = vector.shape_cast %5 : vector<1x16x1xf32> to vector<16x1xf32>
    %7 = vector.broadcast %6 : vector<16x1xf32> to vector<16x256xf32>
    %8 = arith.subf %4, %7 : vector<16x256xf32>
    %cst_9 = arith.constant dense<0xFF800000> : vector<256xf32>
    %9 = vector.multi_reduction <maximumf>, %8, %cst_9 [0] : vector<16x256xf32> to vector<256xf32>
    %10 = vector.shape_cast %9 : vector<256xf32> to vector<1x256xf32>
    %11 = vector.broadcast %10 : vector<1x256xf32> to vector<16x256xf32>
    %12 = arith.subf %8, %11 : vector<16x256xf32>
    %13 = tpu.iota {dimensions = array<i32: 0>} : vector<16x1xi32>
    %cst_10 = arith.constant 0.000000e+00 : f32
    %14 = vector.broadcast %cst_10 : f32 to vector<16x256xf32>
    %15 = arith.cmpf oeq, %12, %14 : vector<16x256xf32>
    %c16_i32 = arith.constant 16 : i32
    %16 = vector.shape_cast %13 : vector<16x1xi32> to vector<16x1xi32>
    %17 = vector.broadcast %16 : vector<16x1xi32> to vector<16x256xi32>
    %18 = vector.broadcast %c16_i32 : i32 to vector<16x256xi32>
    %19 = arith.select %15, %17, %18 : vector<16x256xi1>, vector<16x256xi32>
    %cst_11 = arith.constant dense<2147483647> : vector<256xi32>
    %20 = vector.multi_reduction <minsi>, %19, %cst_11 [0] : vector<16x256xi32> to vector<256xi32>
    %21 = vector.shape_cast %20 : vector<256xi32> to vector<1x256xi32>
    %22 = vector.broadcast %13 : vector<16x1xi32> to vector<16x256xi32>
    %23 = vector.broadcast %21 : vector<1x256xi32> to vector<16x256xi32>
    %24 = arith.cmpi eq, %22, %23 : vector<16x256xi32>
    %25 = arith.extui %24 : vector<16x256xi1> to vector<16x256xi32>
    %26 = arith.sitofp %25 : vector<16x256xi32> to vector<16x256xf32>
    %c0_12 = arith.constant 0 : index
    %c0_13 = arith.constant 0 : index
    %c0_14 = arith.constant 0 : index
    %27 = vector.load %arg5[%c0_12, %c0_13, %c0_14] : memref<1x8x16xf32, #tpu.memory_space<vmem>>, vector<1x8x16xf32>
    %28 = vector.shape_cast %27 : vector<1x8x16xf32> to vector<8x16xf32>
    %cst_15 = arith.constant dense<0.000000e+00> : vector<8x256xf32>
    %29 = tpu.matmul %28, %26, %cst_15 {dimension_numbers = #tpu.dot_dimension_numbers<[1], [0], [0], [1], [0, 0, 1, 1], [], []>} : vector<8x16xf32>, vector<16x256xf32>, vector<8x256xf32> -> vector<8x256xf32>
    %c0_16 = arith.constant 0 : index
    %c0_17 = arith.constant 0 : index
    %c0_18 = arith.constant 0 : index
    %c0_19 = arith.constant 0 : index
    %30 = vector.load %arg7[%c0_16, %c0_17, %c0_18, %c0_19] : memref<1x1x8x256xf32, #tpu.memory_space<vmem>>, vector<1x1x8x256xf32>
    %31 = vector.shape_cast %30 : vector<1x1x8x256xf32> to vector<8x256xf32>
    %32 = vector.shape_cast %29 : vector<8x256xf32> to vector<1x1x8x256xf32>
    tpu.vector_store %arg7[%c0_16, %c0_17, %c0_18, %c0_19], %32 {strides = array<i32>} : memref<1x1x8x256xf32, #tpu.memory_space<vmem>>, vector<1x1x8x256xf32>,
    %33 = math.exp %12 : vector<16x256xf32>
    %cst_20 = arith.constant dense<0.000000e+00> : vector<256xf32>
    %34 = vector.multi_reduction <add>, %33, %cst_20 [0] : vector<16x256xf32> to vector<256xf32>
    %35 = vector.shape_cast %34 : vector<256xf32> to vector<1x256xf32>
    %36 = arith.mulf %33, %12 : vector<16x256xf32>
    %cst_21 = arith.constant dense<0.000000e+00> : vector<256xf32>
    %37 = vector.multi_reduction <add>, %36, %cst_21 [0] : vector<16x256xf32> to vector<256xf32>
    %38 = vector.shape_cast %37 : vector<256xf32> to vector<1x256xf32>
    %39 = arith.divf %38, %35 : vector<1x256xf32>
    %40 = math.log %35 : vector<1x256xf32>
    %41 = arith.subf %39, %40 : vector<1x256xf32>
    %cst_22 = arith.constant 2.77258873 : f32
    %42 = vector.broadcast %cst_22 : f32 to vector<1x256xf32>
    %43 = arith.addf %41, %42 : vector<1x256xf32>
    %c0_i32 = arith.constant 0 : i32
    %44 = arith.cmpi eq, %arg2, %c0_i32 : i32
    %45 = arith.extui %44 : i1 to i32
    %c0_i32_23 = arith.constant 0 : i32
    %46 = arith.cmpi ne, %45, %c0_i32_23 : i32
    scf.if %46 {
      %cst_42 = arith.constant 0.000000e+00 : f32
      %63 = vector.broadcast %cst_42 : f32 to vector<1x1x1x1xf32>
      %c0_43 = arith.constant 0 : index
      %c0_44 = arith.constant 0 : index
      %c0_45 = arith.constant 0 : index
      %c0_46 = arith.constant 0 : index
      %64 = vector.load %arg8[%c0_43, %c0_44, %c0_45, %c0_46] : memref<1x1x1x1xf32, #tpu.memory_space<vmem>>, vector<1x1x1x1xf32>
      tpu.vector_store %arg8[%c0_43, %c0_44, %c0_45, %c0_46], %63 {strides = array<i32>} : memref<1x1x1x1xf32, #tpu.memory_space<vmem>>, vector<1x1x1x1xf32>,
      %cst_47 = arith.constant 0.000000e+00 : f32
      %65 = vector.broadcast %cst_47 : f32 to vector<1x1x16x1xf32>
      %c0_48 = arith.constant 0 : index
      %c0_49 = arith.constant 0 : index
      %c0_50 = arith.constant 0 : index
      %c0_51 = arith.constant 0 : index
      %66 = vector.load %arg9[%c0_48, %c0_49, %c0_50, %c0_51] : memref<1x1x16x1xf32, #tpu.memory_space<vmem>>, vector<1x1x16x1xf32>
      tpu.vector_store %arg9[%c0_48, %c0_49, %c0_50, %c0_51], %65 {strides = array<i32>} : memref<1x1x16x1xf32, #tpu.memory_space<vmem>>, vector<1x1x16x1xf32>,
    } else {
    }
    %c0_24 = arith.constant 0 : index
    %c0_25 = arith.constant 0 : index
    %c0_26 = arith.constant 0 : index
    %c0_27 = arith.constant 0 : index
    %47 = vector.load %arg8[%c0_24, %c0_25, %c0_26, %c0_27] : memref<1x1x1x1xf32, #tpu.memory_space<vmem>>, vector<1x1x1x1xf32>
    %48 = vector.shape_cast %47 : vector<1x1x1x1xf32> to vector<1x1xf32>
    %cst_28 = arith.constant dense<0.000000e+00> : vector<1xf32>
    %49 = vector.multi_reduction <add>, %43, %cst_28 [1] : vector<1x256xf32> to vector<1xf32>
    %50 = vector.shape_cast %49 : vector<1xf32> to vector<1x1xf32>
    %51 = arith.addf %48, %50 : vector<1x1xf32>
    %c0_29 = arith.constant 0 : index
    %c0_30 = arith.constant 0 : index
    %c0_31 = arith.constant 0 : index
    %c0_32 = arith.constant 0 : index
    %52 = vector.load %arg8[%c0_29, %c0_30, %c0_31, %c0_32] : memref<1x1x1x1xf32, #tpu.memory_space<vmem>>, vector<1x1x1x1xf32>
    %53 = vector.shape_cast %52 : vector<1x1x1x1xf32> to vector<1x1xf32>
    %54 = vector.shape_cast %51 : vector<1x1xf32> to vector<1x1x1x1xf32>
    tpu.vector_store %arg8[%c0_29, %c0_30, %c0_31, %c0_32], %54 {strides = array<i32>} : memref<1x1x1x1xf32, #tpu.memory_space<vmem>>, vector<1x1x1x1xf32>,
    %c0_33 = arith.constant 0 : index
    %c0_34 = arith.constant 0 : index
    %c0_35 = arith.constant 0 : index
    %c0_36 = arith.constant 0 : index
    %55 = vector.load %arg9[%c0_33, %c0_34, %c0_35, %c0_36] : memref<1x1x16x1xf32, #tpu.memory_space<vmem>>, vector<1x1x16x1xf32>
    %56 = vector.shape_cast %55 : vector<1x1x16x1xf32> to vector<16x1xf32>
    %cst_37 = arith.constant dense<0.000000e+00> : vector<16xf32>
    %57 = vector.multi_reduction <add>, %26, %cst_37 [1] : vector<16x256xf32> to vector<16xf32>
    %58 = vector.shape_cast %57 : vector<16xf32> to vector<16x1xf32>
    %59 = arith.addf %56, %58 : vector<16x1xf32>
    %c0_38 = arith.constant 0 : index
    %c0_39 = arith.constant 0 : index
    %c0_40 = arith.constant 0 : index
    %c0_41 = arith.constant 0 : index
    %60 = vector.load %arg9[%c0_38, %c0_39, %c0_40, %c0_41] : memref<1x1x16x1xf32, #tpu.memory_space<vmem>>, vector<1x1x16x1xf32>
    %61 = vector.shape_cast %60 : vector<1x1x16x1xf32> to vector<16x1xf32>
    %62 = vector.shape_cast %59 : vector<16x1xf32> to vector<1x1x16x1xf32>
    tpu.vector_store %arg9[%c0_38, %c0_39, %c0_40, %c0_41], %62 {strides = array<i32>} : memref<1x1x16x1xf32, #tpu.memory_space<vmem>>, vector<1x1x16x1xf32>,
    return
  }
  func.func @transform_0(%arg0: i32, %arg1: i32, %arg2: i32) -> (i32, i32, i32, i32) {
    %c0_i32 = arith.constant 0 : i32
    %c0_i32_0 = arith.constant 0 : i32
    return %arg1, %arg0, %c0_i32, %arg2 : i32, i32, i32, i32
  }
  func.func @transform_1(%arg0: i32, %arg1: i32, %arg2: i32) -> (i32, i32, i32) {
    %c0_i32 = arith.constant 0 : i32
    %c0_i32_0 = arith.constant 0 : i32
    %c0_i32_1 = arith.constant 0 : i32
    return %arg0, %c0_i32, %c0_i32_0 : i32, i32, i32
  }
  func.func @transform_2(%arg0: i32, %arg1: i32, %arg2: i32) -> (i32, i32, i32) {
    %c0_i32 = arith.constant 0 : i32
    %c0_i32_0 = arith.constant 0 : i32
    %c0_i32_1 = arith.constant 0 : i32
    return %arg0, %c0_i32, %c0_i32_0 : i32, i32, i32
  }
  func.func @transform_3(%arg0: i32, %arg1: i32, %arg2: i32) -> (i32, i32, i32) {
    %c0_i32 = arith.constant 0 : i32
    %c0_i32_0 = arith.constant 0 : i32
    %c0_i32_1 = arith.constant 0 : i32
    return %arg0, %c0_i32, %c0_i32_0 : i32, i32, i32
  }
  func.func @transform_4(%arg0: i32, %arg1: i32, %arg2: i32) -> (i32, i32, i32, i32) {
    %c0_i32 = arith.constant 0 : i32
    %c0_i32_0 = arith.constant 0 : i32
    return %arg1, %arg0, %c0_i32, %arg2 : i32, i32, i32, i32
  }
  func.func @transform_5(%arg0: i32, %arg1: i32, %arg2: i32) -> (i32, i32, i32, i32) {
    %c0_i32 = arith.constant 0 : i32
    %c0_i32_0 = arith.constant 0 : i32
    %c0_i32_1 = arith.constant 0 : i32
    return %arg0, %arg1, %c0_i32, %c0_i32_0 : i32, i32, i32, i32
  }
  func.func @transform_6(%arg0: i32, %arg1: i32, %arg2: i32) -> (i32, i32, i32, i32) {
    %c0_i32 = arith.constant 0 : i32
    %c0_i32_0 = arith.constant 0 : i32
    %c0_i32_1 = arith.constant 0 : i32
    return %arg0, %arg1, %c0_i32, %c0_i32_0 : i32, i32, i32, i32
  }
}

</mosaic_0001>

<bundles_post_ra>
// kernel: vq_embedding_gs_soft.1
= control target key start
LH: loop header
LB: loop body
LE: loop exit
PB: predicated region body
PF: predicated region fallthrough
CT: control target
= control target key end

     0   :  { %s1164_s21 = smov 0   ;;  %s1166_s22 = smov 0   ;;  %s1320_s0 = inlined_call_operand.vmem [shape: f32[2,2,8,256], index: 0, kind: input, shape index: {}]   ;;  %s1321_s1 = inlined_call_operand.vmem [shape: f32[2,16,8], index: 1, kind: input, shape index: {}]   ;;  %s1322_s2 = inlined_call_operand.vmem [shape: f32[2,8,16], index: 2, kind: input, shape index: {}]   ;;  %s1323_s3 = inlined_call_operand.vmem [shape: f32[2,16,1], index: 3, kind: input, shape index: {}]   ;;  %s1324_s4 = inlined_call_operand.vmem [shape: f32[2,2,8,256], index: 4, kind: output, shape index: {0}]   ;;  %s1325_s5 = inlined_call_operand.vmem [shape: f32[2,2,1,1], index: 5, kind: output, shape index: {1}]   ;;  %s1326_s6 = inlined_call_operand.vmem [shape: f32[2,2,16,1], index: 6, kind: output, shape index: {2}]  }
   0x1   :  { %s1168_s23 = smov 0   ;;  %s1170_s24 = smov 0  }
   0x2   :  { %s1172_s25 = smov 0  }
   0x3 LB: > { %s32_s26 = sadd.s32 1, %s1116_s23  ;;  %s36_s27 = sadd.s32 1, %s1120_s24  ;;  %s1124_s25 = sphi %s1172_s25, %s17_s25   ;;  %s1120_s24 = sphi %s1170_s24, %s1330_s24   ;;  %s1116_s23 = sphi %s1168_s23, %s1329_s23   ;;  %s1112_s22 = sphi %s1166_s22, %s1328_s22   ;;  %s1108_s21 = sphi %s1164_s21, %s1327_s21  }
   0x4   : > { %p34_p0 = scmp.ge.s32.totalorder %s32_s26, 2  ;;  %p995_p1 = scmp.ge.s32.totalorder %s1124_s25, 1 }
   0x5   : > { %p286_p2 = scmp.lt.s32.totalorder %s1124_s25, 5 }
   0x6   : > { %s1332_s26 = smov (%p34_p0, %s32_s26), 0  ;;  %s1334_s27 = smov (!%p34_p0, %s36_s27), %s1120_s24 }
   0x7   : > { %p287_p3 = pnand %p995_p1, %p286_p2  ;;  %p38_p4 = scmp.ge.s32.totalorder %s1334_s27, 2 }
   0x8   : > { %p363_p5 = scmp.lt.s32.totalorder (!%p287_p3), %s1108_s21, 1  ;;  %p365_p6 = scmp.lt.s32.totalorder (!%p287_p3), %s1112_s22, 1 }
   0x9   : > { %s1336_s27 = smov (%p38_p4, %s1334_s27), 0  ;;  %290 = sbr.rel (%p287_p3) target bundleno = 457 (0x1c9), region = 36 }
   0xe   : > { %v1126_v0 = vmov 0.0   ;;  %v1127_v1 = vmov 0   ;;  %s1338_s21 = smov (!%p363_p5, %s1108_s21), 1  ;;  %s1340_s22 = smov (!%p365_p6, %s1112_s22), 1  ;;  %vm424_vm0 = vcmask 64512   ;;  %vm723_vm1 = vcmask 7168  }
   0xf   : > { %495 = vmatprep.mubr.f32.mxu0 %v1126_v0  ;;  %1069 = vset.pattern.permute.xlu0 %v1127_v1  ;;  %s997_s28 = sshll.u32 %s1338_s21, 2  ;;  %s996_s29 = sshll.u32 %s1340_s22, 1  ;;  %v542_v23 = vlaneseq }
  0x10   : > { %656 = vmatprep.mubr.f32.mxu1 %v1126_v0  ;;  %s1024_s30 = sshll.u32 %s1340_s22, 4  ;;  %s1205_s7 = sadd.s32 %s997_s28, %s996_s29 }
  0x11   : > { %s380_s10 = scalar_lea.vmem %s1321_s1, %s1024_s30  ;;  %s998_s11 = sshll.u32 %s1205_s7, 3  ;;  %v1233_v28 = vshrl.u32 %v542_v23, 7 }
  0x12   : > { %s389_s14 = scalar_lea.vmem %s1323_s3, %s1024_s30  ;;  %s374_s17 = scalar_lea.vmem %s1320_s0, %s998_s11  ;;  %v422_v5 = vld [vmem:[%s380_s10] sm:$0xff]  ;;  %v423_v7 = vld [vmem:[%s380_s10 + $0x8] sm:$0xff] }
  0x13   : > { %v508_v2 = vld [vmem:[%s389_s14] sm:$0xff]  ;;  %v421_v3 = vld [vmem:[%s374_s17 + $0x8] sm:$0xff]  ;;  %s1008_s18 = sshll.u32 %s1338_s21, 1  ;;  %s1009_s19 = sshll.u32 %s1340_s22, 2  ;;  %v1236_v33 = vadd.s32 8, %v1233_v28 }
  0x14   : > { %v420_v4 = vld [vmem:[%s374_s17] sm:$0xff]  ;;  %512 = vperm.xlu0 %1069, %v508_v2   ;;  %461 = vmatprep.subr.mxu0 %v421_v3  ;;  %v509_v6 = vld [vmem:[%s389_s14 + $0x8] sm:$0xff]  ;;  %s417_s20 = sadd.s32 %s1009_s19, %s1008_s18  ;;  %s1001_s10 = sshll.u32 %s1340_s22, 3 }
  0x15   : > { %462 = vmatpush1.msra.mxu0 %v420_v4  ;;  %s1010_s28 = sshll.u32 %s417_s20, 3  ;;  %s384_s14 = scalar_lea.vmem %s1322_s2, %s1001_s10 }
  0x16   : > { %1011 = vmatmul.mubr.msk.f32.vlgmr.msra.gmra.mxu0 %vm424_vm0, %v422_v5  ;;  %s1225_s9 = scalar_lea.vmem %s1326_s6, %s1010_s28  ;;  %s409_s15 = sadd.s32 %s996_s29, %s1338_s21 }
  0x17   : > { %501 = vmatprep.mubr.f32.mxu0 %v1126_v0  ;;  %725 = vst.msk [vmem:[%s1225_s9 + $0x8] sm:$0xff] %vm723_vm1, %v1126_v0  ;;  %724 = vst.msk [vmem:[%s1225_s9] sm:$0xff] %vm723_vm1, %v1126_v0  ;;  %s1278_s18 = scalar_lea.vmem %s1325_s5, %s409_s15  ;;  %s402_s29 = scalar_lea.vmem %s1324_s4, %s998_s11 }
  0x18   : > { %517 = vperm.xlu0 %1069, %v509_v6  }
  0x1a   : > { %1012 = vmatmul.mubr.msk.f32.gmra.mxu0 %vm424_vm0, %v423_v7 }
  0x8f   : > { %v513_v8 = vpop.permute.xlu0 %512 }
  0x93   : > { %v518_v11 = vpop.permute.xlu0 %517 }
  0xd6   : > { %v497_v9 = vpop.f32.mrf.mxu0 }
  0xd7   : > { %v520_v13 = vsub.f32 %v497_v9, %v513_v8 }
  0xd8   : > { %v499_v10 = vpop.f32.mrf.mxu0 }
  0xd9   : > { %v521_v16 = vsub.f32 %v499_v10, %v513_v8  ;;  %v1128_v10 = vmov 1.0  }
  0xda   : > { %v503_v12 = vpop.f32.mrf.mxu0 }
  0xdb   : > { %v522_v14 = vsub.f32 %v503_v12, %v518_v11 }
  0xdc   : > { %v505_v15 = vpop.f32.mrf.mxu0 }
  0xdd   : > { %v524_v17 = vmax.f32 %v520_v13, %v522_v14  ;;  %v523_v18 = vsub.f32 %v505_v15, %v518_v11 }
  0xdf   : > { %v525_v19 = vrot.slane %v524_v17, 4  ;;  %v531_v20 = vmax.f32 %v521_v16, %v523_v18 }
  0xe1   : > { %v526_v21 = vmax.f32 %v524_v17, %v525_v19  ;;  %v532_v22 = vrot.slane %v531_v20, 4 }
  0xe3   : > { %v527_v24 = vrot.slane %v526_v21, 2  ;;  %v533_v25 = vmax.f32 %v531_v20, %v532_v22 }
  0xe5   : > { %v528_v26 = vmax.f32 %v526_v21, %v527_v24  ;;  %v534_v27 = vrot.slane %v533_v25, 2 }
  0xe7   : > { %v529_v29 = vrot.slane %v528_v26, 1  ;;  %v535_v30 = vmax.f32 %v533_v25, %v534_v27 }
  0xe9   : > { %v530_v31 = vmax.f32 %v528_v26, %v529_v29  ;;  %v536_v32 = vrot.slane %v535_v30, 1 }
  0xeb   : > { %v538_v34 = vsub.f32 %v520_v13, %v530_v31  ;;  %v540_v35 = vsub.f32 %v522_v14, %v530_v31  ;;  %v537_v36 = vmax.f32 %v535_v30, %v536_v32  ;;  %v587_v14 = vld [vmem:[%s384_s14] sm:$0xff] }
  0xed   : > { %vm545_vm2 = vcmp.eq.f32.partialorder %v538_v34, 0.0  ;;  %vm547_vm3 = vcmp.eq.f32.partialorder %v540_v35, 0.0  ;;  %v665_v37 = vmul.f32 1.442695, %v538_v34  ;;  %v669_v38 = vmul.f32 1.442695, %v540_v35 }
  0xee   : > { %v549_v39 = vsel %vm545_vm2, %v1233_v28, 16  ;;  %v551_v40 = vsel %vm547_vm3, %v1236_v33, 16  ;;  %v539_v41 = vsub.f32 %v521_v16, %v537_v36  ;;  %v541_v42 = vsub.f32 %v523_v18, %v537_v36 }
  0xef   : > { %vm553_vm4 = vcmp.lt.s32.totalorder %v549_v39, %v551_v40  ;;  %1070 = vpow2.f32 %v665_v37  ;;  %vm588_vm2 = vcmask 130048  }
  0xf0   : > { %1072 = vpow2.f32 %v669_v38  ;;  %vm546_vm5 = vcmp.eq.f32.partialorder %v539_v41, 0.0  ;;  %vm548_vm6 = vcmp.eq.f32.partialorder %v541_v42, 0.0  ;;  %v667_v43 = vmul.f32 1.442695, %v539_v41 }
  0xf1   : > { %v550_v44 = vsel %vm546_vm5, %v1233_v28, 16  ;;  %v552_v45 = vsel %vm548_vm6, %v1236_v33, 16  ;;  %v671_v46 = vmul.f32 1.442695, %v541_v42  ;;  %v554_v47 = vsel %vm553_vm4, %v549_v39, %v551_v40 }
  0xf2   : > { %vm564_vm7 = vcmp.lt.s32.totalorder %v550_v44, %v552_v45  ;;  %1074 = vpow2.f32 %v667_v43  ;;  %v555_v48 = vrot.slane %v554_v47, 4  ;;  %vm721_vm4 = vcmask 0  }
  0xf3   : > { %1076 = vpow2.f32 %v671_v46  ;;  %v565_v49 = vsel %vm564_vm7, %v550_v44, %v552_v45  ;;  %722 = vst.msk [vmem:[%s1278_s18] sm:$0x1] %vm721_vm4, %v1126_v0 }
  0xf4   : > { %v566_v50 = vrot.slane %v565_v49, 4  ;;  %vm556_vm8 = vcmp.lt.s32.totalorder %v554_v47, %v555_v48 }
  0xf5   : > { %v557_v51 = vsel %vm556_vm8, %v554_v47, %v555_v48 }
  0xf6   : > { %vm567_vm9 = vcmp.lt.s32.totalorder %v565_v49, %v566_v50  ;;  %v558_v52 = vrot.slane %v557_v51, 2 }
  0xf7   : > { %v568_v53 = vsel %vm567_vm9, %v565_v49, %v566_v50 }
  0xf8   : > { %v569_v54 = vrot.slane %v568_v53, 2  ;;  %vm559_vm10 = vcmp.lt.s32.totalorder %v557_v51, %v558_v52 }
  0xf9   : > { %v560_v55 = vsel %vm559_vm10, %v557_v51, %v558_v52 }
  0xfa   : > { %vm570_vm11 = vcmp.lt.s32.totalorder %v568_v53, %v569_v54  ;;  %v561_v56 = vrot.slane %v560_v55, 1 }
  0xfb   : > { %v571_v57 = vsel %vm570_vm11, %v568_v53, %v569_v54 }
  0xfc   : > { %v1071_v58 = vpop.eup %1070  ;;  %v572_v59 = vrot.slane %v571_v57, 1  ;;  %vm562_vm12 = vcmp.lt.s32.totalorder %v560_v55, %v561_v56 }
  0xfd   : > { %v1073_v60 = vpop.eup %1072  ;;  %v687_v61 = vmul.f32 %v1071_v58, %v538_v34  ;;  %v1243_v62 = vsel %vm562_vm12, %v560_v55, %v561_v56  ;;  %v734_v56 = vld [vmem:[%s1225_s9 + $0x8] sm:$0xff] }
  0xfe   : > { %v689_v63 = vmul.f32 %v1073_v60, %v540_v35  ;;  %vm573_vm13 = vcmp.lt.s32.totalorder %v571_v57, %v572_v59  ;;  %vm577_vm14 = vcmp.eq.s32.totalorder %v1236_v33, %v1243_v62  ;;  %v673_v3 = vadd.f32 %v1073_v60, %v1071_v58 }
  0xff   : > { %v1075_v1 = vpop.eup %1074  ;;  %v1247_v2 = vsel %vm573_vm13, %v571_v57, %v572_v59  ;;  %v1015_v7 = vsel %vm577_vm14, 1.0, %v1126_v0  ;;  %vm575_vm3 = vcmp.eq.s32.totalorder %v1233_v28, %v1243_v62  ;;  %v726_v59 = vld [vmem:[%s1278_s18] sm:$0x1] }
 0x100   : > { %v1077_v4 = vpop.eup %1076  ;;  %v691_v5 = vadd.f32 %v689_v63, %v687_v61  ;;  %v688_v6 = vmul.f32 %v1075_v1, %v539_v41  ;;  %vm578_vm15 = vcmp.eq.s32.totalorder %v1236_v33, %v1247_v2  ;;  %v674_v11 = vrot.slane %v673_v3, 4  ;;  %v733_v63 = vld [vmem:[%s1225_s9] sm:$0xff] }
 0x101   : > { %v690_v8 = vmul.f32 %v1077_v4, %v541_v42  ;;  %v1016_v9 = vsel %vm578_vm15, 1.0, %v1126_v0  ;;  %1017 = vmatprep.subr.msk.mxu1 %vm578_vm15, %v1128_v10  ;;  %v680_v12 = vadd.f32 %v1077_v4, %v1075_v1  ;;  %vm576_vm0 = vcmp.eq.s32.totalorder %v1233_v28, %v1247_v2 }
 0x102   : > { %1018 = vmatpush1.msk.msra.mxu1 %vm577_vm14, %v1128_v10  ;;  %v738_v13 = vadd.f32 %v1016_v9, %v1015_v7  ;;  %v675_v16 = vadd.f32 %v674_v11, %v673_v3  ;;  %v692_v18 = vrot.slane %v691_v5, 4  ;;  %v1014_v53 = vsel %vm576_vm0, 1.0, %v1126_v0 }
 0x103   : > { %v698_v15 = vadd.f32 %v690_v8, %v688_v6  ;;  %1019 = vmatprep.subr.msk.mxu1 %vm576_vm0, %v1128_v10  ;;  %v681_v17 = vrot.slane %v680_v12, 4  ;;  %v1013_v54 = vsel %vm575_vm3, 1.0, %v1126_v0 }
 0x104   : > { %739 = vadd.xlane.f32.xlu0 %v738_v13  ;;  %1020 = vmatpush1.msk.msra.mxu1 %vm575_vm3, %v1128_v10  ;;  %v676_v19 = vrot.slane %v675_v16, 2  ;;  %v693_v26 = vadd.f32 %v692_v18, %v691_v5  ;;  %v735_v55 = vadd.f32 %v1014_v53, %v1013_v54 }
 0x105   : > { %1021 = vmatmul.mubr.msk.f32.vlgmr.msra.gmra.mxu1 %vm588_vm2, %v587_v14  ;;  %v682_v20 = vadd.f32 %v681_v17, %v680_v12  ;;  %v699_v21 = vrot.slane %v698_v15, 4 }
 0x106   : > { %v677_v22 = vadd.f32 %v676_v19, %v675_v16  ;;  %v694_v32 = vrot.slane %v693_v26, 2 }
 0x107   : > { %v683_v23 = vrot.slane %v682_v20, 2  ;;  %v700_v30 = vadd.f32 %v699_v21, %v698_v15 }
 0x108   : > { %v678_v24 = vrot.slane %v677_v22, 1  ;;  %v695_v34 = vadd.f32 %v694_v32, %v693_v26 }
 0x109   : > { %v684_v25 = vadd.f32 %v683_v23, %v682_v20  ;;  %v701_v33 = vrot.slane %v700_v30, 2 }
 0x10a   : > { %v679_v27 = vadd.f32 %v678_v24, %v677_v22  ;;  %v696_v36 = vrot.slane %v695_v34, 1 }
 0x10b   : > { %v685_v29 = vrot.slane %v684_v25, 1  ;;  %v702_v35 = vadd.f32 %v701_v33, %v700_v30 }
 0x10c   : > { %1078 = vrcp.f32 %v679_v27  ;;  %v697_v38 = vadd.f32 %v696_v36, %v695_v34 }
 0x10d   : > { %v686_v31 = vadd.f32 %v685_v29, %v684_v25  ;;  %1080 = vlog2.f32 %v679_v27  ;;  %v703_v37 = vrot.slane %v702_v35, 1 }
 0x10f   : > { %1082 = vrcp.f32 %v686_v31  ;;  %v704_v41 = vadd.f32 %v703_v37, %v702_v35 }
 0x110   : > { %1084 = vlog2.f32 %v686_v31 }
 0x119   : > { %v1079_v39 = vpop.eup %1078 }
 0x11a   : > { %v1081_v40 = vpop.eup %1080  ;;  %v706_v42 = vmul.f32 %v1079_v39, %v697_v38 }
 0x11b   : > { %v710_v44 = vmul.f32 0.6931472, %v1081_v40 }
 0x11c   : > { %v1083_v43 = vpop.eup %1082 }
 0x11d   : > { %v1085_v45 = vpop.eup %1084  ;;  %v708_v46 = vmul.f32 %v1083_v43, %v704_v41  ;;  %v713_v48 = vsub.f32 %v706_v42, %v710_v44 }
 0x11e   : > { %v712_v47 = vmul.f32 0.6931472, %v1085_v45 }
 0x11f   : > { %v715_v50 = vadd.f32 2.7725887, %v713_v48 }
 0x120   : > { %v714_v49 = vsub.f32 %v708_v46, %v712_v47 }
 0x122   : > { %v716_v51 = vadd.f32 2.7725887, %v714_v49 }
 0x124   : > { %v727_v52 = vadd.f32 %v716_v51, %v715_v50 }
 0x126   : > { %728 = vadd.xlane.f32.xlu1 %v727_v52 }
 0x12a   : > { %736 = vadd.xlane.f32.xlu1 %v735_v55 }
 0x18d   : > { %v740_v57 = vpop.xlane.xlu0 %739 }
 0x18e   : > { %v742_v58 = vadd.f32 %v740_v57, %v734_v56 }
 0x190   : > { %745 = vst.msk [vmem:[%s1225_s9 + $0x8] sm:$0xff] %vm723_vm1, %v742_v58 }
 0x1af   : > { %v729_v60 = vpop.xlane.xlu1 %728 }
 0x1b0   : > { %v730_v61 = vadd.f32 %v729_v60, %v726_v59 }
 0x1b2   : > { %732 = vst.msk [vmem:[%s1278_s18] sm:$0x1] %vm721_vm4, %v730_v61 }
 0x1b3   : > { %v737_v1 = vpop.xlane.xlu1 %736 }
 0x1b4   : > { %v741_v2 = vadd.f32 %v737_v1, %v733_v63 }
 0x1b6   : > { %744 = vst.msk [vmem:[%s1225_s9] sm:$0xff] %vm723_vm1, %v741_v2 }
 0x1c5   : > { %v658_v0 = vpop.f32.mrf.mxu1 }
 0x1c6   : > { %663 = vst [vmem:[%s402_s29] sm:$0xff] %v658_v0 }
 0x1c7   : > { %v660_v28 = vpop.f32.mrf.mxu1 }
 0x1c8   : > { %664 = vst [vmem:[%s402_s29 + $0x8] sm:$0xff] %v660_v28 }
 0x1c9 PF: > { %s17_s25 = sadd.s32 1, %s1124_s25   ;;  %s1327_s21 = smov %s1116_s23 }
 0x1ca   : > { %p14_p7 = scmp.ge.s32.totalorder %s17_s25, 6   ;;  %s1328_s22 = smov %s1120_s24 }
 0x1cb   : > { %s1329_s23 = smov %s1332_s26  ;;  %s1330_s24 = smov %s1336_s27 }
 0x1cc   :  { %16 = sbr.rel (!%p14_p7) target bundleno = 3 (0x3), region = 103 }

</bundles_post_ra>
